<compile_context>
chip_gen: v7x
topology: tpu7x:2x2x1
jax: 0.10.0
libtpu: 0.0.40
codegen_flags: <defaults>
</compile_context>

<pallas_src>
import jax
import jax.numpy as jnp
from jax import lax
from jax.experimental import pallas as pl
from jax.experimental.pallas import tpu as pltpu


def _round_up(x: int, m: int) -> int:
    return (x + m - 1) // m * m


def _sublane_granule(dtype) -> int:
    """Packed sublane granule: 8 rows (32-bit), 16 (16-bit), 32 (8-bit)."""
    itemsize = int(jnp.dtype(dtype).itemsize)
    return 8 * max(1, 4 // itemsize)


def _vmem_budget_bytes() -> int:
    """Per-generation scoped-VMEM budget (leaves ~25% headroom for Mosaic)."""
    try:
        cap = int(pltpu.get_tpu_info().vmem_capacity_bytes)
    except Exception:
        cap = 64 * 1024 * 1024  # conservative (v7x-sized) fallback
    return max(16 * 1024 * 1024, min(cap * 3 // 4, 96 * 1024 * 1024))


def _value_head_kernel_o1_vpu(x_ref, w_ref, b_ref, o_ref):
    """output_dim == 1, float32 activations: VPU multiply + XLU lane reduce.

    Inputs are already f32, so there is no upcast copy; accumulation is f32.
    """
    x = x_ref[...]                                   # [TM, D] f32 (streamed)
    w = w_ref[...]                                   # [1, D]  f32 (resident)
    acc = jnp.sum(x * w, axis=-1, keepdims=True)     # [TM, 1] f32
    o_ref[...] = (acc + b_ref[0]).astype(o_ref.dtype)


def _value_head_kernel_mxu(x_ref, w_ref, b_ref, o_ref):
    """General path (sub-32-bit activations and/or output_dim > 1): MXU.

    Contracts the [TM, D] tile against the [O, D] weight directly
    (trans_b-style dimension_numbers), so no wrapper-side transpose and no
    full-tile upcast temporaries; accumulation is f32 inside the MXU.
    """
    acc = lax.dot_general(
        x_ref[...], w_ref[...],
        dimension_numbers=(((1,), (1,)), ((), ())),
        preferred_element_type=jnp.float32)           # [TM, O] f32
    o_ref[...] = (acc + b_ref[...].astype(jnp.float32)).astype(o_ref.dtype)


def _choose_tile_rows(M, D, O, x_isz, w_isz, o_isz, granule, vmem_budget,
                      n_x_buffers, tmp_bytes_per_row, min_steps,
                      target_tile_bytes):
    """Byte-targeted row tile, clamped to the sublane granule and VMEM budget."""
    # ~target_tile_bytes per streamed x buffer (1-4 MiB tiles hit ~85% of the
    # HBM roofline; 256 KiB tiles measured at ~63%).
    tm = max(granule,
             (target_tile_bytes // max(1, D * x_isz)) // granule * granule)

    # Guarantee >= min_steps grid steps whenever M allows it, so the
    # "parallel" grid axis can be sharded across both TensorCores on v7x and
    # the pipeline has something to overlap (per-step overhead ~0.35 us).
    if M >= min_steps * granule:
        tm = min(tm, _round_up(pl.cdiv(M, min_steps), granule))

    def vmem_usage(t):
        return (n_x_buffers * t * D * x_isz        # streamed x buffers
                + 2 * D * O * w_isz                # resident weight (dbl-buf)
                + 2 * t * O * o_isz                # output writeback buffers
                + t * tmp_bytes_per_row)           # in-kernel temporaries

    limit = int(vmem_budget * 0.8)
    while tm > granule and vmem_usage(tm) > limit:
        tm = max(granule, (tm // 2) // granule * granule)

    if tm >= M:
        tm = M   # full-extent block: always layout-legal, single grid step
    return tm


def _pallas_value_head(x2d, weight, bias, *, target_tile_bytes, x_buffer_count):
    M, D = x2d.shape
    O = weight.shape[0]
    out_dtype = x2d.dtype
    x_isz = int(jnp.dtype(x2d.dtype).itemsize)
    o_isz = int(jnp.dtype(out_dtype).itemsize)
    granule = _sublane_granule(x2d.dtype)
    vmem_budget = _vmem_budget_bytes()

    # f32 scalar head -> VPU reduce.  Sub-32-bit activations (bf16/fp8/...) and
    # wider heads -> MXU, which ingests them natively with f32 accumulation
    # (avoids the f32 upcast copy / big VPU product temporaries that would
    # compete with the streaming DMA buffers; also the right choice on v5e
    # which has no bf16 VALU, and on v7x where VMEM/slot pressure matters).
    use_vpu = (O == 1 and x2d.dtype == jnp.float32)

    w_isz = 4 if use_vpu else x_isz
    tmp_bytes_per_row = (D + O) * 4 if use_vpu else O * 4
    tm = _choose_tile_rows(M, D, O, x_isz, w_isz, o_isz, granule, vmem_budget,
                           x_buffer_count, tmp_bytes_per_row,
                           min_steps=4, target_tile_bytes=target_tile_bytes)
    grid = (pl.cdiv(M, tm),)

    cost = pl.CostEstimate(
        flops=2 * M * D * O,
        transcendentals=0,
        bytes_accessed=(M * D * x_isz + D * O * w_isz + O * 4 + M * O * o_isz),
    )
    compiler_params = pltpu.CompilerParams(
        # Disjoint output row-blocks per step -> embarrassingly parallel; lets
        # Mosaic shard grid steps across both TensorCores on v7x.
        dimension_semantics=("parallel",),
        vmem_limit_bytes=vmem_budget,
    )

    x_spec_kwargs = {}
    if x_buffer_count > 2:
        # Sweep knob (perf review): deeper pipelining on the streamed
        # activations if xprof shows exposed DMA.  Default stays 2 (double
        # buffer); usage above already accounts for extra buffers.
        x_spec_kwargs["pipeline_mode"] = pl.Buffered(x_buffer_count)
    x_spec = pl.BlockSpec((tm, D), lambda i: (i, 0), **x_spec_kwargs)

    # NOTE: the output keeps the natural [M, 1] / [M, O] layout.  A lane-dense
    # [num_tiles, TM] output (perf review suggestion) was considered, but the
    # writeback here is only 1/D of the bytes this kernel streams in, so the
    # narrow stores are fully hidden under the activation read DMA and we
    # avoid an in-kernel (TM,1)->(1,TM) relayout plus wrapper-side repacking.
    if use_vpu:
        w_row = weight.reshape(1, D).astype(jnp.float32)      # tiny, resident
        b_scalar = bias.reshape(1).astype(jnp.float32)        # SMEM scalar
        return pl.pallas_call(
            _value_head_kernel_o1_vpu,
            out_shape=jax.ShapeDtypeStruct((M, 1), out_dtype),
            grid=grid,
            in_specs=[
                x_spec,                                            # streamed
                pl.BlockSpec((1, D), lambda i: (0, 0)),            # resident
                pl.BlockSpec(memory_space=pltpu.MemorySpace.SMEM),  # scalar bias
            ],
            out_specs=pl.BlockSpec((tm, 1), lambda i: (i, 0)),
            compiler_params=compiler_params,
            cost_estimate=cost,
        )(x2d, w_row, b_scalar)

    # MXU path: consume the PyTorch-layout [O, D] weight directly (no .T op).
    w_in = weight if weight.dtype == x2d.dtype else weight.astype(x2d.dtype)
    b2d = bias.reshape(1, O)
    return pl.pallas_call(
        _value_head_kernel_mxu,
        out_shape=jax.ShapeDtypeStruct((M, O), out_dtype),
        grid=grid,
        in_specs=[
            x_spec,                                        # streamed
            pl.BlockSpec((O, D), lambda i: (0, 0)),        # resident [O, D]
            pl.BlockSpec((1, O), lambda i: (0, 0)),        # resident bias
        ],
        out_specs=pl.BlockSpec((tm, O), lambda i: (i, 0)),
        compiler_params=compiler_params,
        cost_estimate=cost,
    )(x2d, w_in, b2d)


def value_head_forward(hidden_states, weight, bias, *, dropout_p=0.1,
                       training=False, use_pallas=None,
                       target_tile_bytes=3 * 1024 * 1024, x_buffer_count=2):
    """ValueHead forward: Dropout (identity at eval) followed by Linear.

    hidden_states: [B, S, D]; weight: [O, D] (PyTorch nn.Linear layout); bias: [O].
    """
    if training and dropout_p > 0.0:
        # TODO(synk): training-mode stochastic dropout (pltpu.prng_seed /
        # prng_random_bits) not implemented; kernel matches eval()/inference.
        raise NotImplementedError("training-mode dropout is not implemented")

    B, S, D = hidden_states.shape
    O = weight.shape[0]
    M = B * S
    x2d = hidden_states.reshape(M, D)

    if use_pallas is None:
        # Launch / per-step overhead dwarfs tiny problems; let XLA fuse them.
        use_pallas = M * D * int(jnp.dtype(x2d.dtype).itemsize) >= 256 * 1024

    if use_pallas:
        out2d = _pallas_value_head(x2d, weight, bias,
                                   target_tile_bytes=target_tile_bytes,
                                   x_buffer_count=x_buffer_count)
    else:
        out2d = x2d @ weight.T + bias

    return out2d.reshape(B, S, O)


if __name__ == "__main__":
    # All inputs derived deterministically from PRNGKey(0).
    keys = jax.random.split(jax.random.PRNGKey(0), 16)

    # Case 1: small GPT2-style value head (batch=2, seq=8, hidden=32, O=1),
    # f32, forced through the kernel (single full-extent tile, VPU path).
    B, S, D, O = 2, 8, 32, 1
    hidden_states = jax.random.normal(keys[0], (B, S, D), dtype=jnp.float32)
    weight = jax.random.normal(keys[1], (O, D), dtype=jnp.float32) * 0.02
    bias = jax.random.normal(keys[2], (O,), dtype=jnp.float32) * 0.02
    out = jax.block_until_ready(
        value_head_forward(hidden_states, weight, bias, use_pallas=True))
    ref = hidden_states @ weight.T + bias
    assert out.shape == (B, S, O)
    assert jnp.allclose(out, ref, atol=1e-5, rtol=1e-5)

    # Case 2: multi-step grid (>= 4 row tiles; weight resident across steps).
    B2, S2, D2 = 4, 64, 128
    hs2 = jax.random.normal(keys[3], (B2, S2, D2), dtype=jnp.float32)
    w2 = jax.random.normal(keys[4], (1, D2), dtype=jnp.float32) * 0.02
    b2 = jax.random.normal(keys[5], (1,), dtype=jnp.float32) * 0.02
    out2 = jax.block_until_ready(value_head_forward(hs2, w2, b2, use_pallas=True))
    ref2 = hs2 @ w2.T + b2
    assert jnp.allclose(out2, ref2, atol=1e-4, rtol=1e-4)

    # Case 3: B*S not a multiple of the row tile -> masked partial last block.
    B3, S3, D3 = 2, 100, 128
    hs3 = jax.random.normal(keys[6], (B3, S3, D3), dtype=jnp.float32)
    w3 = jax.random.normal(keys[7], (1, D3), dtype=jnp.float32) * 0.02
    b3 = jax.random.normal(keys[8], (1,), dtype=jnp.float32) * 0.02
    out3 = jax.block_until_ready(value_head_forward(hs3, w3, b3, use_pallas=True))
    ref3 = hs3 @ w3.T + b3
    assert jnp.allclose(out3, ref3, atol=1e-4, rtol=1e-4)

    # Case 4: bf16 activations, O == 1 -> MXU path with 16-row sublane granule.
    B4, S4, D4 = 2, 64, 256
    hs4 = (jax.random.normal(keys[9], (B4, S4, D4), dtype=jnp.float32)
           .astype(jnp.bfloat16))
    w4 = (jax.random.normal(keys[10], (1, D4), dtype=jnp.float32) * 0.02
          ).astype(jnp.bfloat16)
    b4 = (jax.random.normal(keys[11], (1,), dtype=jnp.float32) * 0.02
          ).astype(jnp.bfloat16)
    out4 = jax.block_until_ready(value_head_forward(hs4, w4, b4, use_pallas=True))
    ref4 = (hs4.astype(jnp.float32) @ w4.astype(jnp.float32).T
            + b4.astype(jnp.float32))
    assert out4.dtype == jnp.bfloat16
    assert jnp.allclose(out4.astype(jnp.float32), ref4, atol=1e-2, rtol=1e-2)

    # Case 5: output_dim > 1 -> general MXU path, [O, D] weight consumed directly.
    B5, S5, D5, O5 = 2, 16, 64, 4
    hs5 = jax.random.normal(keys[12], (B5, S5, D5), dtype=jnp.float32)
    w5 = jax.random.normal(keys[13], (O5, D5), dtype=jnp.float32) * 0.02
    b5 = jax.random.normal(keys[14], (O5,), dtype=jnp.float32) * 0.02
    out5 = jax.block_until_ready(value_head_forward(hs5, w5, b5, use_pallas=True))
    ref5 = hs5 @ w5.T + b5
    assert out5.shape == (B5, S5, O5)
    assert jnp.allclose(out5, ref5, atol=1e-4, rtol=1e-4)

    print("KERNEL_OK")
</pallas_src>

<mosaic_0001>
module attributes {stable_mosaic.version = 11 : i64} {
  func.func @_value_head_kernel_o1_vpu(%arg0: i32, %arg1: memref<16x32xf32, #tpu.memory_space<vmem>>, %arg2: memref<1x32xf32, #tpu.memory_space<vmem>>, %arg3: memref<1xf32, #tpu.memory_space<smem>>, %arg4: memref<16x1xf32, #tpu.memory_space<vmem>>) attributes {dimension_semantics = [#tpu.dimension_semantics<parallel>], iteration_bounds = array<i64: 1>, scalar_prefetch = 0 : i64, scratch_operands = 0 : i64, tpu.core_type = #tpu.core_type<tc>, window_params = [{transform_indices = @transform_0, window_bounds = array<i64: 16, 32>}, {pipeline_mode = #tpu.pipeline_mode<synchronous>, transform_indices = @transform_1, window_bounds = array<i64: 1, 32>}, {transform_indices = @transform_2, window_bounds = array<i64: 1>}, {transform_indices = @transform_3, window_bounds = array<i64: 16, 1>}]} {
    %c0 = arith.constant 0 : index
    %c0_0 = arith.constant 0 : index
    %0 = vector.load %arg1[%c0, %c0_0] : memref<16x32xf32, #tpu.memory_space<vmem>>, vector<16x32xf32>
    %c0_1 = arith.constant 0 : index
    %c0_2 = arith.constant 0 : index
    %1 = vector.load %arg2[%c0_1, %c0_2] : memref<1x32xf32, #tpu.memory_space<vmem>>, vector<1x32xf32>
    %2 = vector.broadcast %1 : vector<1x32xf32> to vector<16x32xf32>
    %3 = arith.mulf %0, %2 : vector<16x32xf32>
    %cst = arith.constant dense<0.000000e+00> : vector<16xf32>
    %4 = vector.multi_reduction <add>, %3, %cst [1] : vector<16x32xf32> to vector<16xf32>
    %5 = vector.shape_cast %4 : vector<16xf32> to vector<16x1xf32>
    %c0_3 = arith.constant 0 : index
    %6 = memref.load %arg3[%c0_3] : memref<1xf32, #tpu.memory_space<smem>>
    %7 = vector.broadcast %6 : f32 to vector<16x1xf32>
    %8 = arith.addf %5, %7 : vector<16x1xf32>
    %c0_4 = arith.constant 0 : index
    %c0_5 = arith.constant 0 : index
    %9 = vector.load %arg4[%c0_4, %c0_5] : memref<16x1xf32, #tpu.memory_space<vmem>>, vector<16x1xf32>
    tpu.vector_store %arg4[%c0_4, %c0_5], %8 {strides = array<i32>} : memref<16x1xf32, #tpu.memory_space<vmem>>, vector<16x1xf32>,
    return
  }
  func.func @transform_0(%arg0: i32) -> (i32, i32) {
    %c0_i32 = arith.constant 0 : i32
    %c0_i32_0 = arith.constant 0 : i32
    return %arg0, %c0_i32 : i32, i32
  }
  func.func @transform_1(%arg0: i32) -> (i32, i32) {
    %c0_i32 = arith.constant 0 : i32
    %c0_i32_0 = arith.constant 0 : i32
    %c0_i32_1 = arith.constant 0 : i32
    return %c0_i32, %c0_i32_0 : i32, i32
  }
  func.func @transform_2(%arg0: i32) -> i32 {
    %c0_i32 = arith.constant 0 : i32
    %c0_i32_0 = arith.constant 0 : i32
    return %c0_i32 : i32
  }
  func.func @transform_3(%arg0: i32) -> (i32, i32) {
    %c0_i32 = arith.constant 0 : i32
    %c0_i32_0 = arith.constant 0 : i32
    return %arg0, %c0_i32 : i32, i32
  }
}

</mosaic_0001>

<bundles_post_ra>
// kernel: tpu_custom_call.1
= control target key start
LH: loop header
LB: loop body
LE: loop exit
PB: predicated region body
PF: predicated region fallthrough
CT: control target
= control target key end

     0   :  { %9 = vsyncpa [#allocation4], 0  ;;  %s87_s12 = smov [#allocation3]   ;;  %s134_s0 = inlined_call_operand.hbm [shape: f32[16,32], index: 0, kind: input, shape index: {}]   ;;  %s135_s1 = inlined_call_operand.vmem [shape: f32[1,32], index: 1, kind: input, shape index: {}]   ;;  %s136_s2 = inlined_call_operand.<no memory space> [shape: f32[1], index: 2, kind: input, shape index: {}]   ;;  %s137_s3 = inlined_call_operand.vmem [shape: f32[16,1], index: 3, kind: output, shape index: {}]  }
   0x1   :  { %s15_s13 = sshll.u32 %s87_s12, 4  ;;  %s63_s16 = scalar_lea.hbm %s134_s0, 256  ;;  %s16_s13 = int_to_ptr.vmem [resolvable:$true] %s15_s13 }
   0x2   :  { %p64_p0 = scmp.ne.s32.totalorder %s134_s0, %s63_s16  ;;  %p67_p1 = scmp.lt.u32.totalorder %s63_s16, %s134_s0 }
   0x4   :  { %p69_p2 = pnand %p67_p1, %p64_p0 }
   0x6   :  { %72 = shalt.err (!%p69_p2)
}
   0x7   :  { %s73_s21 = scalar_lea.vmem %s16_s13, 256  ;;  %p78_p4 = scmp.lt.s32.totalorder %s16_s13, %s16_s13 }
   0x8   :  { %p74_p3 = scmp.ne.s32.totalorder %s16_s13, %s73_s21  ;;  %p79_p5 = scmp.lt.s32.totalorder %s73_s21, %s73_s21 }
   0xa   :  { %p80_p6 = por %p79_p5, %p78_p4 }
   0xc   :  { %p81_p7 = pnand %p80_p6, %p74_p3 }
   0xe   :  { %84 = shalt.err (!%p81_p7)
}
   0xf   :  { %s88_s22 = smov 128   ;;  %s89_s23 = smov 8  }
  0x10   :  { %21 = dma.hbm_to_vmem [thread:$0]  %s134_s0, 256, %s16_s13, [#allocation4], %s88_s22, %s88_s22, %s89_s23  }
  0x11   :  { %85 = dma.done.wait [#allocation4], 256  }
  0x12   :  { %86 = vsyncadd [#allocation4], 4294967040  ;;  %v29_v0 = vld [vmem:[#allocation3] sm:$0xff]  ;;  %vm40_vm0 = vcmask 261120   ;;  %v30_v2 = vld [vmem:[#allocation3 + $0x8] sm:$0xff]  ;;  %v48_v7 = vstv %s136_s2  ;;  %vm51_vm1 = vcmask 7168  }
  0x13   :  { %v59_v1 = vld [vmem:[%s135_s1] ss:$0 sm:$0xff] }
  0x14   :  { %v38_v3 = vmul.f32 %v59_v1, %v29_v0  ;;  %v39_v4 = vmul.f32 %v59_v1, %v30_v2 }
  0x16   :  { %v41_v5 = vsel %vm40_vm0, %v38_v3, 0.0  ;;  %v44_v6 = vsel %vm40_vm0, %v39_v4, 0.0 }
  0x17   :  { %42 = vadd.xlane.f32.xlu0 %v41_v5 }
  0x1b   :  { %45 = vadd.xlane.f32.xlu0 %v44_v6 }
  0xa4   :  { %v43_v8 = vpop.xlane.xlu0 %42 }
  0xa5   :  { %v49_v9 = vadd.f32 %v48_v7, %v43_v8 }
  0xa7   :  { %52 = vst.msk [vmem:[%s137_s3] sm:$0xff] %vm51_vm1, %v49_v9 }
  0xa8   :  { %v46_v10 = vpop.xlane.xlu0 %45 }
  0xa9   :  { %v50_v11 = vadd.f32 %v48_v7, %v46_v10 }
  0xab   :  { %53 = vst.msk [vmem:[%s137_s3 + $0x8] sm:$0xff] %vm51_vm1, %v50_v11 }
  0xac   :  { %58 = vsyncpa [#allocation4], 1 }

</bundles_post_ra>
